<compile_context>
chip_gen: v7x
topology: tpu7x:2x2x1
jax: 0.10.0
libtpu: 0.0.40
codegen_flags: <defaults>
</compile_context>

<pallas_src>
import jax
import jax.numpy as jnp
from jax.experimental import pallas as pl
from jax.experimental.pallas import tpu as pltpu

EPS = 1e-5  # PyTorch BatchNorm2d default eps


# ---------------------------------------------------------------------------
# Kernel
# ---------------------------------------------------------------------------
def attention_gate_kernel(
    x_ref,      # (Cin, TM)  skip-connection pixels (channels x pixels), native dtype
    g_ref,      # (Cg,  TM)  gating pixels, native dtype
    wst_ref,    # (Ci, Cin)  BN-folded W_skip, transposed, matmul dtype
    wgt_ref,    # (Ci, Cg)   BN-folded W_gating, transposed, matmul dtype
    b_ref,      # (Ci, 1)    combined BN-folded bias (skip + gating), f32
    wp_ref,     # (Ci, 1)    psi conv weight (as a column), f32
    bp_ref,     # (1, 1)     psi conv bias, f32
    out_ref,    # (Cin, TM)
):
    x = x_ref[...]                                   # (Cin, TM), native dtype
    g = g_ref[...]                                   # (Cg,  TM)

    # Cast MXU operands in-kernel (free VPU work, no extra HBM pass).  bf16
    # operands keep v5e's MXU off the critical path at real TransUNet widths;
    # accumulation is always f32.
    mm_dtype = wst_ref.dtype
    h = jnp.dot(wst_ref[...], x.astype(mm_dtype), preferred_element_type=jnp.float32)
    h = h + jnp.dot(wgt_ref[...], g.astype(mm_dtype), preferred_element_type=jnp.float32)
    h = h + b_ref[...]                               # (Ci, TM) + (Ci, 1)

    psi = jnp.maximum(h, 0.0)                        # ReLU

    # psi projection Ci -> 1: VPU multiply + sublane reduction (skip the MXU,
    # which would waste nearly the whole result buffer on a 1-row output).
    logit = jnp.sum(psi * wp_ref[...], axis=0, keepdims=True) + bp_ref[...]  # (1, TM)

    # sigmoid = 1 / (1 + exp(-logit)); exp and reciprocal both ride the EUP
    # slot (approx vrcp), keeping VALU slots free for the gating multiply.
    att = pl.reciprocal(1.0 + jnp.exp(-logit), approx=True)

    # Gate the skip connection in f32 (x itself is never quantized).
    out_ref[...] = (x.astype(jnp.float32) * att).astype(out_ref.dtype)


# ---------------------------------------------------------------------------
# Wrapper helpers
# ---------------------------------------------------------------------------
def _fold_bn(w, b, bn):
    """Fold eval-mode BatchNorm into 1x1-conv weight (Cin_like, Ci) and bias (Ci,)."""
    gamma, beta, mean, var = bn[0], bn[1], bn[2], bn[3]
    s = gamma * jax.lax.rsqrt(var + EPS)             # (Ci,)
    w_f = w * s[None, :]                             # (Cin_like, Ci)
    b_f = (b[0] - mean) * s + beta                   # (Ci,)
    return w_f, b_f


def _prepare_params(params, matmul_dtype):
    w_s, b_s = _fold_bn(params["w_skip"], params["b_skip"], params["bn_skip"])
    w_g, b_g = _fold_bn(params["w_gating"], params["b_gating"], params["bn_gating"])
    wst = jnp.asarray(w_s.T, matmul_dtype)           # (Ci, Cin)
    wgt = jnp.asarray(w_g.T, matmul_dtype)           # (Ci, Cg)
    b = (b_s + b_g).reshape(-1, 1).astype(jnp.float32)      # (Ci, 1)
    wp = params["w_psi"].astype(jnp.float32)         # (Ci, 1)
    bp = params["b_psi"].astype(jnp.float32)         # (1, 1)
    return wst, wgt, b, wp, bp


def _tpu_memory_model():
    """Generation-aware VMEM budget / per-step byte floor / TensorCore count."""
    try:
        vmem_cap = int(pltpu.get_tpu_info().vmem_capacity_bytes)
    except Exception:
        vmem_cap = 64 << 20                          # conservative (v7x-like)
    if vmem_cap <= (96 << 20):
        # v7x: 64 MiB VMEM per TC, ~3.2 TB/s HBM, 2 TensorCores.  Higher byte
        # floor (same per-step overhead hides ~3x fewer us of transfer).
        return dict(budget=20 << 20, vmem_cap_limit=44 << 20,
                    step_floor=6 << 20, num_cores=2)
    # v5e / v6e: 128 MiB VMEM, single TensorCore -> spend it on big tiles.
    return dict(budget=48 << 20, vmem_cap_limit=96 << 20,
                step_floor=2 << 20, num_cores=1)


def _pick_tile(hw, n_batch, stream_per_px, per_px_vmem, *,
               budget, step_floor, num_cores, min_steps=4):
    """Biggest pixel tile within the VMEM budget, never below the per-step HBM
    byte floor, with a few grid steps for pipeline overlap / megacore."""
    tm = max(128, (budget // per_px_vmem) // 128 * 128)
    if tm >= hw:
        tm = hw                                      # one block covers all pixels

    def total_steps(t):
        return n_batch * pl.cdiv(hw, t)

    # Give the DMA pipeline (and both v7x TensorCores) some steps to overlap,
    # but never shrink below the per-step byte floor that keeps the ~0.35 us
    # per-step overhead amortized.
    while total_steps(tm) < max(min_steps, num_cores) and tm > 128:
        cand = max(128, (tm // 2) // 128 * 128)
        if cand * stream_per_px < step_floor:
            break
        tm = cand

    # v7x: avoid an odd total step count across 2 parallel TensorCores.
    if num_cores > 1 and total_steps(tm) % num_cores != 0:
        n_sp = pl.cdiv(hw, tm)
        cand = max(128, pl.cdiv(pl.cdiv(hw, n_sp + 1), 128) * 128)
        if (cand * stream_per_px >= step_floor
                and cand < tm
                and (n_batch * pl.cdiv(hw, cand)) % num_cores == 0):
            tm = cand
    return tm


# ---------------------------------------------------------------------------
# Public entry point
# ---------------------------------------------------------------------------
def attention_gate_pallas(x_nchw, g_nchw, params, *, tm=None,
                          matmul_dtype=jnp.bfloat16, out_dtype=None):
    """x_nchw: (N, Cin, H, W), g_nchw: (N, Cg, H, W) -> (N, Cin, H, W).

    Inputs are streamed in their native dtype; `matmul_dtype` only affects the
    in-kernel MXU operands (f32 accumulate).  `out_dtype` defaults to x.dtype.
    """
    N, Cin, H, W = x_nchw.shape
    Ng, Cg, Hg, Wg = g_nchw.shape
    assert (N, H, W) == (Ng, Hg, Wg), "x and gating must share batch/spatial dims"
    Ci = params["w_skip"].shape[1]
    HW = H * W
    if out_dtype is None:
        out_dtype = x_nchw.dtype

    x_b = jnp.dtype(x_nchw.dtype).itemsize
    g_b = jnp.dtype(g_nchw.dtype).itemsize
    o_b = jnp.dtype(out_dtype).itemsize
    mm_b = jnp.dtype(matmul_dtype).itemsize

    mem = _tpu_memory_model()
    stream_per_px = Cin * x_b + Cg * g_b + Cin * o_b          # double-buffered streams
    interm_per_px = Ci * 4 + (Cin + Cg) * mm_b + Cin * 4 + 8  # h/psi + casts + f32 x + att
    per_px_vmem = 2 * stream_per_px + interm_per_px

    if tm is None:
        tm = _pick_tile(HW, N, stream_per_px, per_px_vmem,
                        budget=mem["budget"], step_floor=mem["step_floor"],
                        num_cores=mem["num_cores"])
    n_sp = pl.cdiv(HW, tm)                           # ragged tail handled by Pallas

    # NCHW -> (N, C, H*W): a free reshape, streamed in native dtype
    # (no wrapper-side cast => no extra HBM pass).
    x3 = x_nchw.reshape(N, Cin, HW)
    g3 = g_nchw.reshape(N, Cg, HW)

    wst, wgt, b, wp, bp = _prepare_params(params, matmul_dtype)

    need = (2 * tm * stream_per_px + tm * interm_per_px
            + 2 * (wst.size + wgt.size) * mm_b + (4 << 20))
    vmem_limit = int(min(max(need, 32 << 20), mem["vmem_cap_limit"]))

    pix = lambda c: pl.BlockSpec((pl.Squeezed(), c, tm), lambda bb, i: (bb, 0, i))
    full = lambda shape: pl.BlockSpec(shape, lambda bb, i: (0, 0))

    out3 = pl.pallas_call(
        attention_gate_kernel,
        out_shape=jax.ShapeDtypeStruct((N, Cin, HW), out_dtype),
        grid=(N, n_sp),
        in_specs=[
            pix(Cin),                # x
            pix(Cg),                 # gating
            full((Ci, Cin)),         # W_skip (BN-folded, transposed)
            full((Ci, Cg)),          # W_gating (BN-folded, transposed)
            full((Ci, 1)),           # combined bias
            full((Ci, 1)),           # w_psi
            full((1, 1)),            # b_psi
        ],
        out_specs=pix(Cin),
        compiler_params=pltpu.CompilerParams(
            dimension_semantics=("parallel", "parallel"),
            vmem_limit_bytes=vmem_limit),
    )(x3, g3, wst, wgt, b, wp, bp)

    return out3.reshape(N, Cin, H, W)


# ---------------------------------------------------------------------------
# Pure-JAX reference (un-folded math, mirrors the PyTorch module)
# ---------------------------------------------------------------------------
def attention_gate_ref(x_nchw, g_nchw, params):
    N, Cin, H, W = x_nchw.shape
    _, Cg, _, _ = g_nchw.shape
    x = jnp.transpose(x_nchw, (0, 2, 3, 1)).reshape(-1, Cin)
    g = jnp.transpose(g_nchw, (0, 2, 3, 1)).reshape(-1, Cg)

    def bn(v, p):
        gamma, beta, mean, var = p[0], p[1], p[2], p[3]
        return (v - mean) / jnp.sqrt(var + EPS) * gamma + beta

    x1 = bn(x @ params["w_skip"] + params["b_skip"], params["bn_skip"])
    g1 = bn(g @ params["w_gating"] + params["b_gating"], params["bn_gating"])
    psi = jnp.maximum(g1 + x1, 0.0)
    att = jax.nn.sigmoid(psi @ params["w_psi"] + params["b_psi"])
    out = x * att
    return jnp.transpose(out.reshape(N, H, W, Cin), (0, 3, 1, 2))


def init_params(key, in_channels, gating_channels, inter_channels):
    ks = jax.random.split(key, 8)
    f32 = jnp.float32
    return {
        # conv weights stored as (Cin, Cout) for per-pixel matmul
        "w_skip": 0.1 * jax.random.normal(ks[0], (in_channels, inter_channels), f32),
        "b_skip": 0.1 * jax.random.normal(ks[1], (1, inter_channels), f32),
        "w_gating": 0.1 * jax.random.normal(ks[2], (gating_channels, inter_channels), f32),
        "b_gating": 0.1 * jax.random.normal(ks[3], (1, inter_channels), f32),
        # BatchNorm (eval mode): rows = [gamma, beta, running_mean, running_var]
        "bn_skip": jnp.stack([
            1.0 + 0.05 * jax.random.normal(ks[4], (inter_channels,), f32),
            0.05 * jax.random.normal(ks[5], (inter_channels,), f32),
            jnp.zeros((inter_channels,), f32),
            jnp.ones((inter_channels,), f32),
        ]),
        "bn_gating": jnp.stack([
            1.0 + 0.05 * jax.random.normal(ks[6], (inter_channels,), f32),
            0.05 * jax.random.normal(ks[7], (inter_channels,), f32),
            jnp.zeros((inter_channels,), f32),
            jnp.ones((inter_channels,), f32),
        ]),
        "w_psi": 0.1 * jax.random.normal(jax.random.fold_in(key, 100),
                                         (inter_channels, 1), f32),
        "b_psi": 0.1 * jax.random.normal(jax.random.fold_in(key, 101),
                                         (1, 1), f32),
    }


if __name__ == "__main__":
    key = jax.random.PRNGKey(0)
    k_x, k_g, k_p = jax.random.split(key, 3)

    N, Cin, Cg, Ci, H, W = 2, 4, 8, 16, 16, 16
    x = jax.random.normal(k_x, (N, Cin, H, W), jnp.float32)
    gating = jax.random.normal(k_g, (N, Cg, H, W), jnp.float32)
    params = init_params(k_p, Cin, Cg, Ci)

    ref = attention_gate_ref(x, gating, params)

    # Full-f32 MXU path (only deviation vs. PyTorch math is the EUP approx
    # reciprocal inside the sigmoid).
    out_f32 = jax.block_until_ready(
        attention_gate_pallas(x, gating, params, matmul_dtype=jnp.float32))
    assert out_f32.shape == (N, Cin, H, W)
    assert out_f32.dtype == x.dtype
    assert jnp.allclose(out_f32, ref, atol=1e-2, rtol=1e-2), "f32 mismatch vs reference"

    # Default path: bf16 MXU operands (f32 accumulate); x streamed & gated in f32.
    out = jax.block_until_ready(attention_gate_pallas(x, gating, params))
    assert out.shape == (N, Cin, H, W)
    assert out.dtype == x.dtype
    assert jnp.allclose(out, ref, atol=5e-2, rtol=5e-2), "bf16-matmul mismatch vs reference"

    # Optional bf16 output stream (halves the write traffic when the consumer
    # accepts bf16 activations).
    out_bf16 = jax.block_until_ready(
        attention_gate_pallas(x, gating, params, out_dtype=jnp.bfloat16))
    assert out_bf16.shape == (N, Cin, H, W)
    assert out_bf16.dtype == jnp.bfloat16
    assert jnp.allclose(out_bf16.astype(jnp.float32), ref, atol=8e-2, rtol=8e-2), \
        "bf16-output mismatch vs reference"

    print("KERNEL_OK")
</pallas_src>

<mosaic_0001>
module attributes {stable_mosaic.version = 11 : i64} {
  func.func @attention_gate_kernel(%arg0: i32, %arg1: i32, %arg2: memref<1x4x256xf32, #tpu.memory_space<vmem>>, %arg3: memref<1x8x256xf32, #tpu.memory_space<vmem>>, %arg4: memref<16x4xf32, #tpu.memory_space<vmem>>, %arg5: memref<16x8xf32, #tpu.memory_space<vmem>>, %arg6: memref<16x1xf32, #tpu.memory_space<vmem>>, %arg7: memref<16x1xf32, #tpu.memory_space<vmem>>, %arg8: memref<1x1xf32, #tpu.memory_space<vmem>>, %arg9: memref<1x4x256xf32, #tpu.memory_space<vmem>>) attributes {dimension_semantics = [#tpu.dimension_semantics<parallel>, #tpu.dimension_semantics<parallel>], iteration_bounds = array<i64: 2, 1>, scalar_prefetch = 0 : i64, scratch_operands = 0 : i64, tpu.core_type = #tpu.core_type<tc>, window_params = [{transform_indices = @transform_0, window_bounds = array<i64: 1, 4, 256>}, {transform_indices = @transform_1, window_bounds = array<i64: 1, 8, 256>}, {pipeline_mode = #tpu.pipeline_mode<synchronous>, transform_indices = @transform_2, window_bounds = array<i64: 16, 4>}, {pipeline_mode = #tpu.pipeline_mode<synchronous>, transform_indices = @transform_3, window_bounds = array<i64: 16, 8>}, {pipeline_mode = #tpu.pipeline_mode<synchronous>, transform_indices = @transform_4, window_bounds = array<i64: 16, 1>}, {pipeline_mode = #tpu.pipeline_mode<synchronous>, transform_indices = @transform_5, window_bounds = array<i64: 16, 1>}, {pipeline_mode = #tpu.pipeline_mode<synchronous>, transform_indices = @transform_6, window_bounds = array<i64: 1, 1>}, {transform_indices = @transform_7, window_bounds = array<i64: 1, 4, 256>}]} {
    %c0 = arith.constant 0 : index
    %c0_0 = arith.constant 0 : index
    %c0_1 = arith.constant 0 : index
    %0 = vector.load %arg2[%c0, %c0_0, %c0_1] : memref<1x4x256xf32, #tpu.memory_space<vmem>>, vector<1x4x256xf32>
    %1 = vector.shape_cast %0 : vector<1x4x256xf32> to vector<4x256xf32>
    %c0_2 = arith.constant 0 : index
    %c0_3 = arith.constant 0 : index
    %c0_4 = arith.constant 0 : index
    %2 = vector.load %arg3[%c0_2, %c0_3, %c0_4] : memref<1x8x256xf32, #tpu.memory_space<vmem>>, vector<1x8x256xf32>
    %3 = vector.shape_cast %2 : vector<1x8x256xf32> to vector<8x256xf32>
    %c0_5 = arith.constant 0 : index
    %c0_6 = arith.constant 0 : index
    %4 = vector.load %arg4[%c0_5, %c0_6] : memref<16x4xf32, #tpu.memory_space<vmem>>, vector<16x4xf32>
    %cst = arith.constant dense<0.000000e+00> : vector<16x256xf32>
    %5 = tpu.matmul %4, %1, %cst {dimension_numbers = #tpu.dot_dimension_numbers<[1], [0], [0], [1], [0, 0, 1, 1], [], []>} : vector<16x4xf32>, vector<4x256xf32>, vector<16x256xf32> -> vector<16x256xf32>
    %c0_7 = arith.constant 0 : index
    %c0_8 = arith.constant 0 : index
    %6 = vector.load %arg5[%c0_7, %c0_8] : memref<16x8xf32, #tpu.memory_space<vmem>>, vector<16x8xf32>
    %cst_9 = arith.constant dense<0.000000e+00> : vector<16x256xf32>
    %7 = tpu.matmul %6, %3, %cst_9 {dimension_numbers = #tpu.dot_dimension_numbers<[1], [0], [0], [1], [0, 0, 1, 1], [], []>} : vector<16x8xf32>, vector<8x256xf32>, vector<16x256xf32> -> vector<16x256xf32>
    %8 = arith.addf %5, %7 : vector<16x256xf32>
    %c0_10 = arith.constant 0 : index
    %c0_11 = arith.constant 0 : index
    %9 = vector.load %arg6[%c0_10, %c0_11] : memref<16x1xf32, #tpu.memory_space<vmem>>, vector<16x1xf32>
    %10 = vector.broadcast %9 : vector<16x1xf32> to vector<16x256xf32>
    %11 = arith.addf %8, %10 : vector<16x256xf32>
    %cst_12 = arith.constant 0.000000e+00 : f32
    %12 = vector.broadcast %cst_12 : f32 to vector<16x256xf32>
    %13 = arith.maximumf %11, %12 : vector<16x256xf32>
    %c0_13 = arith.constant 0 : index
    %c0_14 = arith.constant 0 : index
    %14 = vector.load %arg7[%c0_13, %c0_14] : memref<16x1xf32, #tpu.memory_space<vmem>>, vector<16x1xf32>
    %15 = vector.broadcast %14 : vector<16x1xf32> to vector<16x256xf32>
    %16 = arith.mulf %13, %15 : vector<16x256xf32>
    %cst_15 = arith.constant dense<0.000000e+00> : vector<256xf32>
    %17 = vector.multi_reduction <add>, %16, %cst_15 [0] : vector<16x256xf32> to vector<256xf32>
    %18 = vector.shape_cast %17 : vector<256xf32> to vector<1x256xf32>
    %c0_16 = arith.constant 0 : index
    %c0_17 = arith.constant 0 : index
    %19 = vector.load %arg8[%c0_16, %c0_17] : memref<1x1xf32, #tpu.memory_space<vmem>>, vector<1x1xf32>
    %20 = vector.broadcast %19 : vector<1x1xf32> to vector<1x256xf32>
    %21 = arith.addf %18, %20 : vector<1x256xf32>
    %cst_18 = arith.constant 0.000000e+00 : f32
    %22 = vector.broadcast %cst_18 : f32 to vector<1x256xf32>
    %23 = arith.subf %22, %21 : vector<1x256xf32>
    %24 = math.exp %23 : vector<1x256xf32>
    %cst_19 = arith.constant 1.000000e+00 : f32
    %25 = vector.broadcast %cst_19 : f32 to vector<1x256xf32>
    %26 = arith.addf %25, %24 : vector<1x256xf32>
    %27 = tpu.reciprocal %26 {approx = true} : vector<1x256xf32> -> vector<1x256xf32>
    %28 = vector.broadcast %27 : vector<1x256xf32> to vector<4x256xf32>
    %29 = arith.mulf %1, %28 : vector<4x256xf32>
    %c0_20 = arith.constant 0 : index
    %c0_21 = arith.constant 0 : index
    %c0_22 = arith.constant 0 : index
    %30 = vector.load %arg9[%c0_20, %c0_21, %c0_22] : memref<1x4x256xf32, #tpu.memory_space<vmem>>, vector<1x4x256xf32>
    %31 = vector.shape_cast %30 : vector<1x4x256xf32> to vector<4x256xf32>
    %32 = vector.shape_cast %29 : vector<4x256xf32> to vector<1x4x256xf32>
    tpu.vector_store %arg9[%c0_20, %c0_21, %c0_22], %32 {strides = array<i32>} : memref<1x4x256xf32, #tpu.memory_space<vmem>>, vector<1x4x256xf32>,
    return
  }
  func.func @transform_0(%arg0: i32, %arg1: i32) -> (i32, i32, i32) {
    %c0_i32 = arith.constant 0 : i32
    %c0_i32_0 = arith.constant 0 : i32
    return %arg0, %c0_i32, %arg1 : i32, i32, i32
  }
  func.func @transform_1(%arg0: i32, %arg1: i32) -> (i32, i32, i32) {
    %c0_i32 = arith.constant 0 : i32
    %c0_i32_0 = arith.constant 0 : i32
    return %arg0, %c0_i32, %arg1 : i32, i32, i32
  }
  func.func @transform_2(%arg0: i32, %arg1: i32) -> (i32, i32) {
    %c0_i32 = arith.constant 0 : i32
    %c0_i32_0 = arith.constant 0 : i32
    %c0_i32_1 = arith.constant 0 : i32
    return %c0_i32, %c0_i32_0 : i32, i32
  }
  func.func @transform_3(%arg0: i32, %arg1: i32) -> (i32, i32) {
    %c0_i32 = arith.constant 0 : i32
    %c0_i32_0 = arith.constant 0 : i32
    %c0_i32_1 = arith.constant 0 : i32
    return %c0_i32, %c0_i32_0 : i32, i32
  }
  func.func @transform_4(%arg0: i32, %arg1: i32) -> (i32, i32) {
    %c0_i32 = arith.constant 0 : i32
    %c0_i32_0 = arith.constant 0 : i32
    %c0_i32_1 = arith.constant 0 : i32
    return %c0_i32, %c0_i32_0 : i32, i32
  }
  func.func @transform_5(%arg0: i32, %arg1: i32) -> (i32, i32) {
    %c0_i32 = arith.constant 0 : i32
    %c0_i32_0 = arith.constant 0 : i32
    %c0_i32_1 = arith.constant 0 : i32
    return %c0_i32, %c0_i32_0 : i32, i32
  }
  func.func @transform_6(%arg0: i32, %arg1: i32) -> (i32, i32) {
    %c0_i32 = arith.constant 0 : i32
    %c0_i32_0 = arith.constant 0 : i32
    %c0_i32_1 = arith.constant 0 : i32
    return %c0_i32, %c0_i32_0 : i32, i32
  }
  func.func @transform_7(%arg0: i32, %arg1: i32) -> (i32, i32, i32) {
    %c0_i32 = arith.constant 0 : i32
    %c0_i32_0 = arith.constant 0 : i32
    return %arg0, %c0_i32, %arg1 : i32, i32, i32
  }
}

</mosaic_0001>

<bundles_post_ra>
// kernel: tpu_custom_call.1
= control target key start
LH: loop header
LB: loop body
LE: loop exit
PB: predicated region body
PF: predicated region fallthrough
CT: control target
= control target key end

     0   :  { %s1086_s0 = inlined_call_operand.vmem [shape: f32[2,4,256], index: 0, kind: input, shape index: {}]   ;;  %s1087_s1 = inlined_call_operand.vmem [shape: f32[2,8,256], index: 1, kind: input, shape index: {}]   ;;  %s1088_s2 = inlined_call_operand.vmem [shape: f32[16,4], index: 2, kind: input, shape index: {}]   ;;  %s1089_s3 = inlined_call_operand.vmem [shape: f32[16,8], index: 3, kind: input, shape index: {}]   ;;  %s1090_s4 = inlined_call_operand.vmem [shape: f32[16,1], index: 4, kind: input, shape index: {}]   ;;  %s1091_s5 = inlined_call_operand.vmem [shape: f32[16,1], index: 5, kind: input, shape index: {}]   ;;  %s1092_s6 = inlined_call_operand.<no memory space> [shape: f32[1,1], index: 6, kind: input, shape index: {}]   ;;  %s1093_s7 = inlined_call_operand.hbm [shape: f32[2,4,256], index: 7, kind: output, shape index: {}]  }
   0x1   :  { %v12_v0 = vstv %s1092_s6 }
   0x2   :  { %13 = vst [vmem:[#allocation2] sm:$0x1] %v12_v0 }
   0x3   :  { %14 = vsyncpa [#allocation4], 0 }
   0x4   :  { %16 = vsyncpa [#allocation4 + $0x1], 0  ;;  %s939_s26 = smov 0   ;;  %s941_s27 = smov 0  }
   0x5   :  { %s943_s28 = smov 0   ;;  %s945_s29 = smov 0  }
   0x6   :  { %s947_s30 = smov 0   ;;  %s949_s8 = smov 0  }
   0x7 LB: > { %s717_s6 = sadd.s32 4294967295, %s891_s8   ;;  %s718_s9 = sadd.s32 4294967294, %s891_s8   ;;  %s891_s8 = sphi %s949_s8, %s22_s8   ;;  %s887_s30 = sphi %s947_s30, %s1103_s30   ;;  %s883_s29 = sphi %s945_s29, %s1102_s29   ;;  %s879_s28 = sphi %s943_s28, %s1101_s28   ;;  %s875_s27 = sphi %s941_s27, %s1100_s27   ;;  %s871_s26 = sphi %s939_s26, %s1099_s26  }
   0x8   : > { %s34_s10 = sadd.s32 1, %s887_s30  ;;  %s204_s11 = sadd.s32 1, %s879_s28 }
   0x9   : > { %p36_p0 = scmp.ge.s32.totalorder %s34_s10, 2  ;;  %p214_p1 = scmp.ne.s32.totalorder %s879_s28, %s875_s27 }
   0xa   : > { %p215_p2 = scmp.eq.s32.totalorder %s717_s6, 1  ;;  %p220_p3 = scmp.ne.s32.totalorder %s875_s27, %s871_s26 }
   0xb   : > { %s1105_s10 = smov (%p36_p0, %s34_s10), 0  ;;  %p221_p5 = scmp.eq.s32.totalorder %s718_s9, 1 }
   0xc   : > { %1095 = sst [smem:[#allocation6_spill]] %s1105_s10  ;;  %p979_p4 = por %p215_p2, %p214_p1 }
   0xd   : > { %s199_s13 = ssub.s32 %s887_s30, %s1105_s10  ;;  %p721_p6 = scmp.ge.s32.totalorder %s891_s8, 1 }
   0xe   : > { %p202_p7 = scmp.eq.s32.totalorder %s199_s13, 0  ;;  %p986_p8 = por %p221_p5, %p220_p3 }
   0xf   : > { %p280_p9 = scmp.lt.s32.totalorder %s891_s8, 3 }
  0x10   : > { %s992_s15 = scalar_select %p202_p7, %s879_s28, %s204_s11  }
  0x11   : > { %p281_p10 = pnand %p721_p6, %p280_p9 }
  0x12   : > { %p326_p11 = scmp.lt.s32.totalorder (!%p281_p10), %s883_s29, 1  ;;  %v893_v1 = vmov (!%p281_p10), 0.0   ;;  %v528_v2 = vld [vmem:[%s1090_s4] sm:$0xff] (!%p281_p10)  ;;  %v894_v3 = vmov (!%p281_p10), 0   ;;  %v529_v5 = vld [vmem:[%s1090_s4 + $0x8] sm:$0xff] (!%p281_p10)  ;;  %vm446_vm0 = vcmask (!%p281_p10), 1043456   ;;  %v584_v44 = vlaneseq (!%p281_p10) }
  0x13   : > { %284 = sbr.rel (%p281_p10) target bundleno = 323 (0x143), region = 48  ;;  %424 = vmatprep.mubr.f32.mxu1 (!%p281_p10), %v893_v1  ;;  %515 = vmatprep.mubr.f32.mxu0 (!%p281_p10), %v893_v1  ;;  %v548_v4 = vld [vmem:[%s1091_s5] sm:$0xff] (!%p281_p10)  ;;  %v549_v7 = vld [vmem:[%s1091_s5 + $0x8] sm:$0xff] (!%p281_p10)  ;;  %vm353_vm1 = vcmask (!%p281_p10), 64512   ;;  %vm439_vm2 = vcmask (!%p281_p10), 31744   ;;  %s322_s25 = sand.u32 (!%p281_p10), 1, %s875_s27  }
  0x14   : > { %802 = vset.pattern.permute.xlu0 (!%p281_p10), %v894_v3  ;;  %803 = vset.pattern.permute.xlu1 (!%p281_p10), %v894_v3  ;;  %v351_v6 = vld [vmem:[%s1089_s3] sm:$0xff] (!%p281_p10)  ;;  %v352_v14 = vld [vmem:[%s1089_s3 + $0x8] sm:$0xff] (!%p281_p10)  ;;  %v585_v49 = vshrl.u32 (!%p281_p10), %v584_v44, 7  ;;  %s722_s6 = sshll.u32 (!%p281_p10), %s322_s25, 3  ;;  %s607_s20 = scalar_lea.sflag (!%p281_p10), [#allocation4], %s322_s25 }
  0x15   : > { %532 = vperm.xlu0 (!%p281_p10), %802, %v528_v2   ;;  %552 = vperm.xlu1 (!%p281_p10), %803, %v548_v4   ;;  %v349_v12 = vld [vmem:[%s1088_s2] sm:$0xff] (!%p281_p10)  ;;  %v350_v15 = vld [vmem:[%s1088_s2 + $0x8] sm:$0xff] (!%p281_p10)  ;;  %s324_s11 = scalar_lea.vmem (!%p281_p10), [#allocation3], %s722_s6 }
  0x16   : > { %v578_v13 = vld [vmem:[#allocation2] sm:$0x1] (!%p281_p10)  ;;  %v586_v54 = vsub.s32 (!%p281_p10), 0, %v585_v49  ;;  %s623_s13 = sshll.u32 (!%p281_p10), %s324_s11, 4  ;;  %s1041_s13 = int_to_ptr.vmem [resolvable:$true] %s623_s13 }
  0x19   : > { %537 = vperm.xlu0 (!%p281_p10), %802, %v529_v5   ;;  %557 = vperm.xlu1 (!%p281_p10), %803, %v549_v7  }
  0x1a   : > { %s327_s18 = scalar_select %p326_p11, %s883_s29, 1 }
  0x1c   : > { %s739_s21 = sshll.u32 %s327_s18, 4  ;;  %s738_s22 = sshll.u32 %s327_s18, 3 }
  0x1d   : > { %s343_s9 = scalar_lea.vmem %s1087_s1, %s739_s21  ;;  %s333_s16 = scalar_lea.vmem %s1086_s0, %s738_s22  ;;  %581 = vperm.xlu0 %802, %v578_v13  }
  0x1e   : > { %v348_v8 = vld [vmem:[%s343_s9 + $0x8] sm:$0xff]  ;;  %v347_v9 = vld [vmem:[%s343_s9] sm:$0xff]  ;;  %s740_s9 = sshll.u32 %s883_s29, 7  ;;  %s813_s18 = scalar_lea.vmem %s1041_s13, 128 }
  0x1f   : > { %v1017_v10 = vld [vmem:[%s333_s16] sm:$0xff]  ;;  %360 = vmatprep.subr.mxu1 %v348_v8  ;;  %s1039_s19 = scalar_lea.hbm %s1093_s7, %s740_s9  ;;  %p814_p12 = scmp.ne.s32.totalorder %s1041_s13, %s813_s18 }
  0x20   : > { %v438_v11 = vcombine.high %v1017_v10, %v1017_v10  ;;  %361 = vmatpush1.msra.mxu1 %v347_v9  ;;  %s895_s29 = smov [#allocation3]  }
  0x21   : > { %727 = vmatmul.mubr.msk.f32.vlgmr.msra.gmra.mrb[0].mxu1 %vm353_vm1, %v351_v6  ;;  %p815_p13 = pnand %p814_p12, %p979_p4  ;;  %s817_s21 = sshll.u32 %s895_s29, 4  ;;  %s818_s21 = int_to_ptr.vmem [resolvable:$false] %s817_s21 }
  0x22   : > { %729 = vmatprep.subr.msk.mxu0 %vm446_vm0, %v438_v11  ;;  %430 = vmatprep.mubr.f32.mxu1 %v893_v1  ;;  %s819_s10 = scalar_lea.vmem %s818_s21, 256  ;;  %p820_p1 = scmp.lt.s32.totalorder %s1041_s13, %s818_s21 }
  0x23   : > { %730 = vmatpush1.msk.msra.mxu0 %vm446_vm0, %v1017_v10  ;;  %p816_p0 = pneg %p815_p13  ;;  %p821_p2 = scmp.lt.s32.totalorder %s819_s10, %s813_s18 }
  0x24   : > { %731 = vmatmul.mubr.msk.f32.vlgmr.msra.gmra.mrb[0].mxu0 %vm439_vm2, %v349_v12 }
  0x25   : > { %521 = vmatprep.mubr.f32.mxu0 %v893_v1  ;;  %728 = vmatmul.mubr.msk.f32.gmra.mrb[2].mxu1 %vm353_vm1, %v352_v14  ;;  %p822_p3 = por %p821_p2, %p820_p1 }
  0x27   : > { %p823_p5 = pnand %p822_p3, %p816_p0 }
  0x28   : > { %732 = vmatmul.mubr.msk.f32.gmra.mrb[2].mxu0 %vm439_vm2, %v350_v15 }
  0x94   : > { %v533_v18 = vpop.permute.xlu0 %532  ;;  %v553_v27 = vpop.permute.xlu1 %552 }
  0x98   : > { %v538_v31 = vpop.permute.xlu0 %537  ;;  %v558_v38 = vpop.permute.xlu1 %557 }
  0x9c   : > { %v582_v56 = vpop.permute.xlu0 %581 }
  0x9d   : > { %v587_v60 = vrot.slane %v582_v56, %v586_v54 }
  0xf4   : > { %v426_v16 = vpop.f32.mrb[0].mxu1 }
  0xf5   : > { %v428_v17 = vpop.f32.mrb[1].mxu1 }
  0xf7   : > { %v517_v19 = vpop.f32.mrb[0].mxu0 }
  0xf8   : > { %v518_v20 = vadd.f32 %v517_v19, %v426_v16  ;;  %v519_v21 = vpop.f32.mrb[1].mxu0  ;;  %v432_v23 = vpop.f32.mrb[2].mxu1 }
  0xf9   : > { %v520_v22 = vadd.f32 %v519_v21, %v428_v17  ;;  %v434_v25 = vpop.f32.mrb[3].mxu1 }
  0xfa   : > { %v540_v24 = vadd.f32 %v533_v18, %v518_v20 }
  0xfb   : > { %v541_v26 = vadd.f32 %v533_v18, %v520_v22  ;;  %v523_v28 = vpop.f32.mrb[2].mxu0 }
  0xfc   : > { %v524_v29 = vadd.f32 %v523_v28, %v432_v23  ;;  %v525_v30 = vpop.f32.mrb[3].mxu0  ;;  %v544_v33 = vmax.f32 %v540_v24, 0.0 }
  0xfd   : > { %v526_v32 = vadd.f32 %v525_v30, %v434_v25  ;;  %v545_v35 = vmax.f32 %v541_v26, 0.0 }
  0xfe   : > { %v542_v34 = vadd.f32 %v538_v31, %v524_v29  ;;  %v560_v40 = vmul.f32 %v553_v27, %v544_v33 }
  0xff   : > { %v543_v36 = vadd.f32 %v538_v31, %v526_v32  ;;  %v561_v42 = vmul.f32 %v553_v27, %v545_v35 }
 0x100   : > { %v546_v37 = vmax.f32 %v542_v34, 0.0 }
 0x101   : > { %v547_v39 = vmax.f32 %v543_v36, 0.0 }
 0x102   : > { %v562_v41 = vmul.f32 %v558_v38, %v546_v37 }
 0x103   : > { %v563_v43 = vmul.f32 %v558_v38, %v547_v39 }
 0x104   : > { %v564_v45 = vadd.f32 %v562_v41, %v560_v40 }
 0x105   : > { %v571_v46 = vadd.f32 %v563_v43, %v561_v42 }
 0x106   : > { %v565_v47 = vrot.slane %v564_v45, 4 }
 0x107   : > { %v572_v48 = vrot.slane %v571_v46, 4 }
 0x108   : > { %v566_v50 = vadd.f32 %v565_v47, %v564_v45 }
 0x109   : > { %v573_v51 = vadd.f32 %v572_v48, %v571_v46 }
 0x10a   : > { %v567_v52 = vrot.slane %v566_v50, 2 }
 0x10b   : > { %v574_v53 = vrot.slane %v573_v51, 2 }
 0x10c   : > { %v568_v55 = vadd.f32 %v567_v52, %v566_v50 }
 0x10d   : > { %v575_v57 = vadd.f32 %v574_v53, %v573_v51 }
 0x10e   : > { %v569_v58 = vrot.slane %v568_v55, 1 }
 0x10f   : > { %v576_v59 = vrot.slane %v575_v57, 1 }
 0x110   : > { %v570_v61 = vadd.f32 %v569_v58, %v568_v55 }
 0x111   : > { %v577_v62 = vadd.f32 %v576_v59, %v575_v57 }
 0x112   : > { %v588_v63 = vadd.f32 %v587_v60, %v570_v61 }
 0x113   : > { %v589_v0 = vadd.f32 %v587_v60, %v577_v62 }
 0x114   : > { %v590_v1 = vsub.f32 0.0, %v588_v63 }
 0x115   : > { %v591_v2 = vsub.f32 0.0, %v589_v0 }
 0x116   : > { %v592_v3 = vmul.f32 1.442695, %v590_v1 }
 0x117   : > { %v594_v4 = vmul.f32 1.442695, %v591_v2 }
 0x118   : > { %805 = vpow2.f32 %v592_v3 }
 0x119   : > { %807 = vpow2.f32 %v594_v4 }
 0x122   : > { %v806_v5 = vpop.eup %805 }
 0x123   : > { %v808_v6 = vpop.eup %807  ;;  %v596_v7 = vadd.f32 1.0, %v806_v5 }
 0x124   : > { %v597_v8 = vadd.f32 1.0, %v808_v6 }
 0x125   : > { %809 = vrcp.f32 %v596_v7 }
 0x126   : > { %811 = vrcp.f32 %v597_v8 }
 0x12f   : > { %v810_v9 = vpop.eup %809 }
 0x130   : > { %v812_v11 = vpop.eup %811 }
 0x131   : > { %v602_v12 = vcombine.low %v810_v9, %v812_v11 }
 0x133   : > { %v604_v13 = vmul.f32 %v602_v12, %v1017_v10 }
 0x135   : > { %605 = vst [vmem:[%s324_s11] sm:$0xff] %v604_v13 }
 0x136   : > { %826 = shalt.err (!%p823_p5)
}
 0x137   : > { %s827_s22 = scalar_lea.hbm %s1039_s19, 128  ;;  %s831_s25 = scalar_lea.hbm %s1093_s7, 256 }
 0x138   : > { %p828_p6 = scmp.ne.s32.totalorder %s1039_s19, %s827_s22  ;;  %p832_p10 = scmp.lt.u32.totalorder %s1039_s19, %s1093_s7 }
 0x139   : > { %p833_p11 = scmp.lt.u32.totalorder %s831_s25, %s827_s22  ;;  %p835_p13 = scmp.lt.u32.totalorder %s827_s22, %s1039_s19 }
 0x13a   : > { %p829_p7 = pnand %p828_p6, %p979_p4 }
 0x13b   : > { %p834_p12 = por %p833_p11, %p832_p10 }
 0x13c   : > { %p830_p9 = pneg %p829_p7 }
 0x13d   : > { %p836_p0 = por %p835_p13, %p834_p12 }
 0x13f   : > { %p837_p1 = pnand %p836_p0, %p830_p9 }
 0x141   : > { %840 = shalt.err (!%p837_p1)
}
 0x142   : > { %745 = dma.vmem_to_hbm [thread:$0]  (%p979_p4), %s1041_s13, 128, %s1039_s19, %s607_s20  }
 0x143 PF: > { %p751_p2 = scmp.ge.s32.totalorder %s891_s8, 2  ;;  %s635_s11 = sand.u32 1, %s871_s26  }
 0x144   : > { %s636_s16 = scalar_lea.sflag [#allocation4], %s635_s11 }
 0x145   : > { %p748_p3 = pnand %p751_p2, %p986_p8 }
 0x147   : > { %866 = dma.done.wait (!%p748_p3), %s636_s16, 128  }
 0x148   : > { %868 = vsyncadd (!%p748_p3), %s636_s16, 4294967168  ;;  %s22_s8 = sadd.s32 1, %s891_s8   ;;  %s1098_s12 = sld [smem:[#allocation6_spill]] }
 0x149   : > { %p19_p5 = scmp.ge.s32.totalorder %s22_s8, 4   ;;  %s1099_s26 = smov %s875_s27 }
 0x14a   : > { %s1100_s27 = smov %s879_s28  ;;  %s1101_s28 = smov %s992_s15 }
 0x14b   : > { %s1102_s29 = smov %s887_s30  ;;  %21 = sbr.rel (!%p19_p5) target bundleno = 7 (0x7), region = 86 }
 0x14e   : > { %s1103_s30 = smov %s1098_s12 }
 0x152   :  { %641 = vsyncpa [#allocation4], 1 }
 0x153   :  { %643 = vsyncpa [#allocation4 + $0x1], 1 }

</bundles_post_ra>
